<compile_context>
chip_gen: v7x
topology: tpu7x:2x2x1
jax: 0.10.0
libtpu: 0.0.40
codegen_flags: <defaults>
</compile_context>

<pallas_src>
import functools

import jax
import jax.numpy as jnp
import numpy as np
from jax.experimental import pallas as pl
from jax.experimental.pallas import tpu as pltpu


# ----------------------------------------------------------------------------
# Helpers
# ----------------------------------------------------------------------------
def _vmem_capacity_bytes():
    """Physical VMEM per core; conservative (v7x, 64 MiB) fallback if query fails."""
    try:
        return int(pltpu.get_tpu_info().vmem_capacity_bytes)
    except Exception:
        return 64 * 2**20


_VMEM_CAP = _vmem_capacity_bytes()
_VMEM_HEADROOM = 8 * 2**20                 # leave room for compiler-internal scratch
_WEIGHT_PANEL_BUDGET = _VMEM_CAP // 4      # one resident-weight buffer (x2 bufs ~ half VMEM)


def _tile(dim, target, align):
    """Largest multiple of `align` that divides `dim` and is <= target, else full dim."""
    if dim <= target:
        return dim
    t = (target // align) * align
    while t >= align:
        if dim % t == 0:
            return t
        t -= align
    # TODO(synk): masked tail tiles for ragged lengths instead of full-dim fallback.
    return dim


def _vmem_limit(streamed_bytes, resident_bytes, scratch_bytes):
    """Actual double-buffered block set + scratch + headroom, capped below physical VMEM."""
    need = 2 * streamed_bytes + 2 * resident_bytes + scratch_bytes + 6 * 2**20
    cap = _VMEM_CAP - _VMEM_HEADROOM
    return int(max(16 * 2**20, min(cap, need)))


def _head_group(num_heads, dh, din, itemsize):
    """Largest divisor G of num_heads whose (G*dh, Din) weight panel fits the budget.
    G == num_heads (full dim) or G*dh % 8 == 0 keeps the BlockSpec legal."""
    legal = [g for g in range(num_heads, 0, -1)
             if num_heads % g == 0 and (g == num_heads or (g * dh) % 8 == 0)]
    for g in legal:
        if g * dh * din * itemsize <= _WEIGHT_PANEL_BUDGET:
            return g
    return legal[-1]


def _dout_panel(dout, din, itemsize):
    """Largest 128-multiple divisor of Dout whose (td, Din) panel fits the budget."""
    if dout * din * itemsize <= _WEIGHT_PANEL_BUDGET:
        return dout
    cands = [d for d in range(128, dout, 128) if dout % d == 0]
    if not cands:
        return dout
    for td in sorted(cands, reverse=True):
        if td * din * itemsize <= _WEIGHT_PANEL_BUDGET:
            return td
    return cands[0]


def mask_to_bias(mask):
    return 1000000000.0 * (mask - 1.0)


# ----------------------------------------------------------------------------
# Kernel 1: full-width projection  x @ W^T + b  -> (B, H, L, dh) via lane scatter
# ----------------------------------------------------------------------------
def proj_heads_kernel(x_ref, w_ref, b_ref, o_ref, *, out_scale, g_heads, dh):
    # x_ref: (1, tl, Din)  w_ref: (G*dh, Din)  b_ref: (G, 1, dh)  o_ref: (1, G, tl, dh)
    y = jax.lax.dot_general(                       # (tl, G*dh): full-width MXU matmul,
        x_ref[0], w_ref[...],                      # torch (out, in) weight, contract dim 1
        (((1,), (1,)), ((), ())),
        preferred_element_type=jnp.float32,
    )
    for g in range(g_heads):                       # cheap in-VMEM head scatter (no HBM transpose)
        yg = y[:, g * dh:(g + 1) * dh] + b_ref[g]  # (tl, dh) + (1, dh)
        if out_scale != 1.0:                       # softmax scale folded into the Q path
            yg = yg * out_scale
        o_ref[0, g] = yg.astype(o_ref.dtype)


def pallas_proj_heads(x, w, b, num_heads, out_scale=1.0):
    """x: (B, L, Din); w: (H*dh, Din) torch layout; b: (H*dh,) -> (B, H, L, dh)."""
    B, L, Din = x.shape
    Dout = w.shape[0]
    H = num_heads
    dh = Dout // H
    assert dh * H == Dout
    tl = _tile(L, 256, 8)
    nl = L // tl

    itm = x.dtype.itemsize
    G = _head_group(H, dh, Din, itm)               # heads per weight panel (normally all)
    ng = H // G

    w = jnp.asarray(w).astype(x.dtype)             # keep torch (out, in) layout — no transpose
    b3 = jnp.asarray(b).reshape(H, 1, dh).astype(jnp.float32)

    streamed = (tl * Din + G * tl * dh) * itm + G * dh * 4   # x block + out block + bias
    resident = G * dh * Din * itm                            # weight panel (constant index)

    kernel = functools.partial(proj_heads_kernel, out_scale=float(out_scale),
                               g_heads=G, dh=dh)
    return pl.pallas_call(
        kernel,
        out_shape=jax.ShapeDtypeStruct((B, H, L, dh), x.dtype),
        grid=(ng, B, nl),                          # group outermost -> weight DMA'd once per group
        in_specs=[
            pl.BlockSpec((1, tl, Din), lambda g, b_, l: (b_, l, 0)),
            pl.BlockSpec((G * dh, Din), lambda g, b_, l: (g, 0)),     # VMEM-resident
            pl.BlockSpec((G, 1, dh), lambda g, b_, l: (g, 0, 0)),
        ],
        out_specs=pl.BlockSpec((1, G, tl, dh), lambda g, b_, l: (b_, g, l, 0)),
        compiler_params=pltpu.CompilerParams(
            dimension_semantics=("parallel", "parallel", "parallel"),
            vmem_limit_bytes=_vmem_limit(streamed, resident, 0),
        ),
        cost_estimate=pl.CostEstimate(
            flops=int(2 * B * L * Din * Dout),
            transcendentals=0,
            bytes_accessed=int((x.size + w.size + B * H * L * dh) * itm + b3.size * 4),
        ),
    )(x, w, b3)


# ----------------------------------------------------------------------------
# Kernel 2: flash-style scaled-dot-product attention (online softmax)
# ----------------------------------------------------------------------------
def flash_attn_kernel(*refs, has_mask):
    if has_mask:
        q_ref, k_ref, v_ref, mask_ref, o_ref, m_sc, l_sc, acc_sc = refs
    else:
        q_ref, k_ref, v_ref, o_ref, m_sc, l_sc, acc_sc = refs
        mask_ref = None
    ki = pl.program_id(3)

    @pl.when(ki == 0)
    def _():
        m_sc[...] = jnp.full_like(m_sc, -jnp.inf)
        l_sc[...] = jnp.zeros_like(l_sc)
        acc_sc[...] = jnp.zeros_like(acc_sc)

    q = q_ref[0, 0]                        # (tq, dqk), softmax scale already folded in
    k = k_ref[0, 0]                        # (tk, dqk)
    v = v_ref[0, 0]                        # (tk, dv)

    s = jax.lax.dot_general(               # (tq, tk), contract feature dim, no transpose
        q, k, (((1,), (1,)), ((), ())), preferred_element_type=jnp.float32
    )
    if has_mask:
        # mask -> additive bias in-kernel; mask may be int8/bool (4x less HBM than f32 bias)
        s = s + 1000000000.0 * (mask_ref[...].astype(jnp.float32) - 1.0)

    m_prev = m_sc[...]
    m_new = jnp.maximum(m_prev, jnp.max(s, axis=-1, keepdims=True))
    alpha = jnp.exp(m_prev - m_new)
    p = jnp.exp(s - m_new)
    l_sc[...] = alpha * l_sc[...] + jnp.sum(p, axis=-1, keepdims=True)
    acc_sc[...] = alpha * acc_sc[...] + jnp.dot(
        p.astype(v.dtype), v, preferred_element_type=jnp.float32
    )
    m_sc[...] = m_new

    @pl.when(ki == pl.num_programs(3) - 1)
    def _():
        # exact reciprocal keeps the 2e-5 check tight; approx=True would move it to the EUP
        o_ref[0, 0] = (acc_sc[...] * pl.reciprocal(l_sc[...], approx=False)).astype(o_ref.dtype)


def pallas_flash_attention(qh, kh, vh, mask=None):
    """qh/kh/vh: (B, H, L, d); mask: optional (Lq, Lk) any dtype (1=attend, 0=masked)."""
    B, H, Lq, dqk = qh.shape
    Lk = kh.shape[2]
    dv = vh.shape[3]
    has_mask = mask is not None

    # q-tile sublane alignment: 8 for >=32-bit data, stricter if a packed mask is streamed
    q_align = 8
    if has_mask:
        q_align = max(8, {1: 32, 2: 16}.get(mask.dtype.itemsize, 8))
    tq = _tile(Lq, 512, q_align)           # bigger q tile -> fewer K/V/mask HBM re-reads
    tk = _tile(Lk, 512, 128)
    nq, nk = Lq // tq, Lk // tk

    in_specs = [
        pl.BlockSpec((1, 1, tq, dqk), lambda b, h, qi, ki: (b, h, qi, 0)),
        pl.BlockSpec((1, 1, tk, dqk), lambda b, h, qi, ki: (b, h, ki, 0)),
        pl.BlockSpec((1, 1, tk, dv), lambda b, h, qi, ki: (b, h, ki, 0)),
    ]
    inputs = [qh, kh, vh]
    if has_mask:
        in_specs.append(pl.BlockSpec((tq, tk), lambda b, h, qi, ki: (qi, ki)))
        inputs.append(mask)

    itm = qh.dtype.itemsize
    streamed = (tq * dqk + tk * dqk + tk * dv + tq * dv) * itm
    if has_mask:
        streamed += tq * tk * mask.dtype.itemsize
    scratch_bytes = (2 * tq + tq * dv) * 4

    bytes_accessed = (qh.size + kh.size + vh.size + B * H * Lq * dv) * itm
    if has_mask:
        bytes_accessed += B * H * mask.size * mask.dtype.itemsize

    kernel = functools.partial(flash_attn_kernel, has_mask=has_mask)
    return pl.pallas_call(
        kernel,
        out_shape=jax.ShapeDtypeStruct((B, H, Lq, dv), qh.dtype),
        grid=(B, H, nq, nk),               # Lk (online-softmax reduction) innermost
        in_specs=in_specs,
        out_specs=pl.BlockSpec((1, 1, tq, dv), lambda b, h, qi, ki: (b, h, qi, 0)),
        scratch_shapes=[
            pltpu.VMEM((tq, 1), jnp.float32),   # running max
            pltpu.VMEM((tq, 1), jnp.float32),   # running sum
            pltpu.VMEM((tq, dv), jnp.float32),  # un-normalized accumulator
        ],
        compiler_params=pltpu.CompilerParams(
            dimension_semantics=("parallel", "parallel", "parallel", "arbitrary"),
            vmem_limit_bytes=_vmem_limit(streamed, 0, scratch_bytes),
        ),
        cost_estimate=pl.CostEstimate(
            flops=int(2 * B * H * Lq * Lk * (dqk + dv)),
            transcendentals=int(B * H * Lq * Lk),
            bytes_accessed=int(bytes_accessed),
        ),
    )(*inputs)


# ----------------------------------------------------------------------------
# Kernel 3: output projection fused with head merge (single full-K matmul)
# ----------------------------------------------------------------------------
def fc_merge_kernel(oh_ref, w_ref, b_ref, o_ref, *, num_heads):
    # oh_ref: (1, H, tl, dv)  w_ref: (td, H*dv) torch layout  b_ref: (1, td)  o_ref: (1, tl, td)
    x = jnp.concatenate([oh_ref[0, h] for h in range(num_heads)], axis=-1)  # (tl, H*dv)
    y = jax.lax.dot_general(                                                # full-K contraction
        x, w_ref[...], (((1,), (1,)), ((), ())), preferred_element_type=jnp.float32
    )
    o_ref[0] = (y + b_ref[...]).astype(o_ref.dtype)


def pallas_fc_merge(oh, w_fc, b_fc):
    """oh: (B, H, L, dv); w_fc: (Dout, H*dv) torch layout; b_fc: (Dout,) -> (B, L, Dout)."""
    B, H, L, dv = oh.shape
    Dout, Din = w_fc.shape
    assert Din == H * dv
    tl = _tile(L, 256, 8)
    nl = L // tl

    itm = oh.dtype.itemsize
    td = _dout_panel(Dout, Din, itm)       # weight panel (normally full Dout, tiled only if huge)
    nd = Dout // td

    w = jnp.asarray(w_fc).astype(oh.dtype)                  # torch layout kept: no transpose pre-pass
    b2 = jnp.asarray(b_fc).reshape(1, Dout).astype(jnp.float32)

    streamed = (H * tl * dv + tl * td) * itm + td * 4
    resident = td * Din * itm

    kernel = functools.partial(fc_merge_kernel, num_heads=H)
    return pl.pallas_call(
        kernel,
        out_shape=jax.ShapeDtypeStruct((B, L, Dout), oh.dtype),
        grid=(nd, B, nl),                  # Dout panel outermost -> weight panel DMA'd once
        in_specs=[
            pl.BlockSpec((1, H, tl, dv), lambda d, b_, l: (b_, 0, l, 0)),
            pl.BlockSpec((td, Din), lambda d, b_, l: (d, 0)),           # VMEM-resident
            pl.BlockSpec((1, td), lambda d, b_, l: (0, d)),
        ],
        out_specs=pl.BlockSpec((1, tl, td), lambda d, b_, l: (b_, l, d)),
        compiler_params=pltpu.CompilerParams(
            dimension_semantics=("parallel", "parallel", "parallel"),
            vmem_limit_bytes=_vmem_limit(streamed, resident, 0),
        ),
        cost_estimate=pl.CostEstimate(
            flops=int(2 * B * L * Din * Dout),
            transcendentals=0,
            bytes_accessed=int((oh.size + w.size + B * L * Dout) * itm + b2.size * 4),
        ),
    )(oh, w, b2)


# ----------------------------------------------------------------------------
# Module-level forward
# ----------------------------------------------------------------------------
def multi_head_attention_forward(q, k, v, params, *, num_heads, hidden_dim, mask=None):
    Lq = q.shape[1]
    Lk = k.shape[1]
    # NOTE: reference module scales by (hidden_dim // num_heads)**-0.5, not the qk head dim
    scale = float((hidden_dim // num_heads) ** (-0.5))

    # Projections written directly in (B, H, L, d) layout; softmax scale folded into Q.
    Qh = pallas_proj_heads(q, params["Wq"], params["bq"], num_heads, out_scale=scale)
    Kh = pallas_proj_heads(k, params["Wk"], params["bk"], num_heads)
    Vh = pallas_proj_heads(v, params["Wv"], params["bv"], num_heads)

    if mask is not None:
        assert mask.shape == (Lq, Lk)

    # Flash attention; dropout = identity (eval).  TODO(synk): training-mode dropout.
    Oh = pallas_flash_attention(Qh, Kh, Vh, mask)          # (B, H, Lq, dv)

    # Output projection fused with the 'b h l d -> b l (h d)' merge.
    return pallas_fc_merge(Oh, params["fc"], params["bfc"])


# ----------------------------------------------------------------------------
# Deterministic parameter construction (matches __init__ shapes / init stds)
# ----------------------------------------------------------------------------
def make_params(key, num_heads, hidden_dim, qk_dim=None, v_dim=None, dtype=jnp.float32):
    if qk_dim is None:
        qk_dim = hidden_dim
    if v_dim is None:
        v_dim = hidden_dim
    ks = jax.random.split(key, 8)
    std_q = (hidden_dim * (qk_dim // num_heads)) ** (-0.5)
    std_kv = hidden_dim ** (-0.5)
    std_fc = v_dim ** (-0.5)
    bnd_in = 1.0 / np.sqrt(hidden_dim)
    bnd_fc = 1.0 / np.sqrt(v_dim)
    return {
        "Wq": std_q * jax.random.normal(ks[0], (qk_dim, hidden_dim), dtype),
        "Wk": std_kv * jax.random.normal(ks[1], (qk_dim, hidden_dim), dtype),
        "Wv": std_kv * jax.random.normal(ks[2], (v_dim, hidden_dim), dtype),
        "fc": std_fc * jax.random.normal(ks[3], (hidden_dim, v_dim), dtype),
        "bq": jax.random.uniform(ks[4], (qk_dim,), dtype, -bnd_in, bnd_in),
        "bk": jax.random.uniform(ks[5], (qk_dim,), dtype, -bnd_in, bnd_in),
        "bv": jax.random.uniform(ks[6], (v_dim,), dtype, -bnd_in, bnd_in),
        "bfc": jax.random.uniform(ks[7], (hidden_dim,), dtype, -bnd_fc, bnd_fc),
    }


# ----------------------------------------------------------------------------
# Pure-JAX reference (for correctness check only)
# ----------------------------------------------------------------------------
def reference_forward(q, k, v, params, *, num_heads, hidden_dim, mask=None):
    B, Lq, _ = q.shape
    Lk = k.shape[1]
    qk_dim = params["Wq"].shape[0]
    v_dim = params["Wv"].shape[0]
    dqk = qk_dim // num_heads
    dv = v_dim // num_heads
    scale = (hidden_dim // num_heads) ** (-0.5)

    Q = q @ params["Wq"].T + params["bq"]
    K = k @ params["Wk"].T + params["bk"]
    V = v @ params["Wv"].T + params["bv"]
    Qh = Q.reshape(B, Lq, num_heads, dqk).transpose(0, 2, 1, 3)
    Kh = K.reshape(B, Lk, num_heads, dqk).transpose(0, 2, 1, 3)
    Vh = V.reshape(B, Lk, num_heads, dv).transpose(0, 2, 1, 3)
    s = jnp.einsum("bhqd,bhkd->bhqk", Qh, Kh) * scale
    if mask is not None:
        s = s + mask_to_bias(mask.astype(s.dtype))
    w = jax.nn.softmax(s, axis=-1)
    o = jnp.einsum("bhqk,bhkd->bhqd", w, Vh)
    o = o.transpose(0, 2, 1, 3).reshape(B, Lq, v_dim)
    return o @ params["fc"].T + params["bfc"]


# ----------------------------------------------------------------------------
if __name__ == "__main__":
    B, L, hidden_dim, num_heads = 2, 8, 32, 4
    key = jax.random.PRNGKey(0)
    kq, kk, kv, kp = jax.random.split(key, 4)

    q = jax.random.normal(kq, (B, L, hidden_dim), jnp.float32)
    k = jax.random.normal(kk, (B, L, hidden_dim), jnp.float32)
    v = jax.random.normal(kv, (B, L, hidden_dim), jnp.float32)
    params = make_params(kp, num_heads, hidden_dim)

    # (q_len, k_len) mask — 1 = attend, 0 = masked (causal here).
    mask_f32 = jnp.tril(jnp.ones((L, L), jnp.float32))
    mask_i8 = mask_f32.astype(jnp.int8)    # compact mask: 4x less attention HBM traffic

    out_masked_i8 = multi_head_attention_forward(
        q, k, v, params, num_heads=num_heads, hidden_dim=hidden_dim, mask=mask_i8)
    out_masked_f32 = multi_head_attention_forward(
        q, k, v, params, num_heads=num_heads, hidden_dim=hidden_dim, mask=mask_f32)
    out_nomask = multi_head_attention_forward(
        q, k, v, params, num_heads=num_heads, hidden_dim=hidden_dim, mask=None)
    jax.block_until_ready((out_masked_i8, out_masked_f32, out_nomask))

    ref_masked = reference_forward(
        q, k, v, params, num_heads=num_heads, hidden_dim=hidden_dim, mask=mask_f32)
    ref_nomask = reference_forward(
        q, k, v, params, num_heads=num_heads, hidden_dim=hidden_dim, mask=None)

    np.testing.assert_allclose(np.asarray(out_masked_i8), np.asarray(ref_masked),
                               rtol=2e-5, atol=2e-5)
    np.testing.assert_allclose(np.asarray(out_masked_f32), np.asarray(ref_masked),
                               rtol=2e-5, atol=2e-5)
    np.testing.assert_allclose(np.asarray(out_nomask), np.asarray(ref_nomask),
                               rtol=2e-5, atol=2e-5)
    assert out_masked_i8.shape == (B, L, hidden_dim)

    print("KERNEL_OK")
</pallas_src>

<mosaic_0001>
module attributes {stable_mosaic.version = 11 : i64} {
  func.func @proj_heads_kernel(%arg0: i32, %arg1: i32, %arg2: i32, %arg3: memref<1x8x32xf32, #tpu.memory_space<vmem>>, %arg4: memref<32x32xf32, #tpu.memory_space<vmem>>, %arg5: memref<4x1x8xf32, #tpu.memory_space<vmem>>, %arg6: memref<1x4x8x8xf32, #tpu.memory_space<vmem>>) attributes {dimension_semantics = [#tpu.dimension_semantics<parallel>, #tpu.dimension_semantics<parallel>, #tpu.dimension_semantics<parallel>], iteration_bounds = array<i64: 1, 2, 1>, scalar_prefetch = 0 : i64, scratch_operands = 0 : i64, tpu.core_type = #tpu.core_type<tc>, window_params = [{transform_indices = @transform_0, window_bounds = array<i64: 1, 8, 32>}, {transform_indices = @transform_1, window_bounds = array<i64: 32, 32>}, {transform_indices = @transform_2, window_bounds = array<i64: 4, 1, 8>}, {transform_indices = @transform_3, window_bounds = array<i64: 1, 4, 8, 8>}]} {
    %c0 = arith.constant 0 : index
    %c0_0 = arith.constant 0 : index
    %c0_1 = arith.constant 0 : index
    %0 = vector.load %arg3[%c0, %c0_0, %c0_1] : memref<1x8x32xf32, #tpu.memory_space<vmem>>, vector<1x8x32xf32>
    %1 = vector.shape_cast %0 : vector<1x8x32xf32> to vector<8x32xf32>
    %c0_2 = arith.constant 0 : index
    %c0_3 = arith.constant 0 : index
    %2 = vector.load %arg4[%c0_2, %c0_3] : memref<32x32xf32, #tpu.memory_space<vmem>>, vector<32x32xf32>
    %cst = arith.constant dense<0.000000e+00> : vector<8x32xf32>
    %3 = tpu.matmul %1, %2, %cst {dimension_numbers = #tpu.dot_dimension_numbers<[1], [1], [0], [0], [0, 0, 1, 0], [], []>} : vector<8x32xf32>, vector<32x32xf32>, vector<8x32xf32> -> vector<8x32xf32>
    %4 = vector.extract_strided_slice %3 {offsets = [0, 0], sizes = [8, 8], strides = [1, 1]} : vector<8x32xf32> to vector<8x8xf32>
    %c0_4 = arith.constant 0 : index
    %c0_5 = arith.constant 0 : index
    %c0_6 = arith.constant 0 : index
    %5 = vector.load %arg5[%c0_4, %c0_5, %c0_6] : memref<4x1x8xf32, #tpu.memory_space<vmem>>, vector<1x1x8xf32>
    %6 = vector.shape_cast %5 : vector<1x1x8xf32> to vector<1x8xf32>
    %7 = vector.broadcast %6 : vector<1x8xf32> to vector<8x8xf32>
    %8 = arith.addf %4, %7 : vector<8x8xf32>
    %cst_7 = arith.constant 0.353553385 : f32
    %9 = vector.broadcast %cst_7 : f32 to vector<8x8xf32>
    %10 = arith.mulf %8, %9 : vector<8x8xf32>
    %c0_8 = arith.constant 0 : index
    %c0_9 = arith.constant 0 : index
    %c0_10 = arith.constant 0 : index
    %c0_11 = arith.constant 0 : index
    %11 = vector.load %arg6[%c0_8, %c0_9, %c0_10, %c0_11] : memref<1x4x8x8xf32, #tpu.memory_space<vmem>>, vector<1x1x8x8xf32>
    %12 = vector.shape_cast %11 : vector<1x1x8x8xf32> to vector<8x8xf32>
    %13 = vector.shape_cast %10 : vector<8x8xf32> to vector<1x1x8x8xf32>
    tpu.vector_store %arg6[%c0_8, %c0_9, %c0_10, %c0_11], %13 {strides = array<i32>} : memref<1x4x8x8xf32, #tpu.memory_space<vmem>>, vector<1x1x8x8xf32>,
    %14 = vector.extract_strided_slice %3 {offsets = [0, 8], sizes = [8, 8], strides = [1, 1]} : vector<8x32xf32> to vector<8x8xf32>
    %c1 = arith.constant 1 : index
    %c0_12 = arith.constant 0 : index
    %c0_13 = arith.constant 0 : index
    %15 = vector.load %arg5[%c1, %c0_12, %c0_13] : memref<4x1x8xf32, #tpu.memory_space<vmem>>, vector<1x1x8xf32>
    %16 = vector.shape_cast %15 : vector<1x1x8xf32> to vector<1x8xf32>
    %17 = vector.broadcast %16 : vector<1x8xf32> to vector<8x8xf32>
    %18 = arith.addf %14, %17 : vector<8x8xf32>
    %cst_14 = arith.constant 0.353553385 : f32
    %19 = vector.broadcast %cst_14 : f32 to vector<8x8xf32>
    %20 = arith.mulf %18, %19 : vector<8x8xf32>
    %c0_15 = arith.constant 0 : index
    %c1_16 = arith.constant 1 : index
    %c0_17 = arith.constant 0 : index
    %c0_18 = arith.constant 0 : index
    %21 = vector.load %arg6[%c0_15, %c1_16, %c0_17, %c0_18] : memref<1x4x8x8xf32, #tpu.memory_space<vmem>>, vector<1x1x8x8xf32>
    %22 = vector.shape_cast %21 : vector<1x1x8x8xf32> to vector<8x8xf32>
    %23 = vector.shape_cast %20 : vector<8x8xf32> to vector<1x1x8x8xf32>
    tpu.vector_store %arg6[%c0_15, %c1_16, %c0_17, %c0_18], %23 {strides = array<i32>} : memref<1x4x8x8xf32, #tpu.memory_space<vmem>>, vector<1x1x8x8xf32>,
    %24 = vector.extract_strided_slice %3 {offsets = [0, 16], sizes = [8, 8], strides = [1, 1]} : vector<8x32xf32> to vector<8x8xf32>
    %c2 = arith.constant 2 : index
    %c0_19 = arith.constant 0 : index
    %c0_20 = arith.constant 0 : index
    %25 = vector.load %arg5[%c2, %c0_19, %c0_20] : memref<4x1x8xf32, #tpu.memory_space<vmem>>, vector<1x1x8xf32>
    %26 = vector.shape_cast %25 : vector<1x1x8xf32> to vector<1x8xf32>
    %27 = vector.broadcast %26 : vector<1x8xf32> to vector<8x8xf32>
    %28 = arith.addf %24, %27 : vector<8x8xf32>
    %cst_21 = arith.constant 0.353553385 : f32
    %29 = vector.broadcast %cst_21 : f32 to vector<8x8xf32>
    %30 = arith.mulf %28, %29 : vector<8x8xf32>
    %c0_22 = arith.constant 0 : index
    %c2_23 = arith.constant 2 : index
    %c0_24 = arith.constant 0 : index
    %c0_25 = arith.constant 0 : index
    %31 = vector.load %arg6[%c0_22, %c2_23, %c0_24, %c0_25] : memref<1x4x8x8xf32, #tpu.memory_space<vmem>>, vector<1x1x8x8xf32>
    %32 = vector.shape_cast %31 : vector<1x1x8x8xf32> to vector<8x8xf32>
    %33 = vector.shape_cast %30 : vector<8x8xf32> to vector<1x1x8x8xf32>
    tpu.vector_store %arg6[%c0_22, %c2_23, %c0_24, %c0_25], %33 {strides = array<i32>} : memref<1x4x8x8xf32, #tpu.memory_space<vmem>>, vector<1x1x8x8xf32>,
    %34 = vector.extract_strided_slice %3 {offsets = [0, 24], sizes = [8, 8], strides = [1, 1]} : vector<8x32xf32> to vector<8x8xf32>
    %c3 = arith.constant 3 : index
    %c0_26 = arith.constant 0 : index
    %c0_27 = arith.constant 0 : index
    %35 = vector.load %arg5[%c3, %c0_26, %c0_27] : memref<4x1x8xf32, #tpu.memory_space<vmem>>, vector<1x1x8xf32>
    %36 = vector.shape_cast %35 : vector<1x1x8xf32> to vector<1x8xf32>
    %37 = vector.broadcast %36 : vector<1x8xf32> to vector<8x8xf32>
    %38 = arith.addf %34, %37 : vector<8x8xf32>
    %cst_28 = arith.constant 0.353553385 : f32
    %39 = vector.broadcast %cst_28 : f32 to vector<8x8xf32>
    %40 = arith.mulf %38, %39 : vector<8x8xf32>
    %c0_29 = arith.constant 0 : index
    %c3_30 = arith.constant 3 : index
    %c0_31 = arith.constant 0 : index
    %c0_32 = arith.constant 0 : index
    %41 = vector.load %arg6[%c0_29, %c3_30, %c0_31, %c0_32] : memref<1x4x8x8xf32, #tpu.memory_space<vmem>>, vector<1x1x8x8xf32>
    %42 = vector.shape_cast %41 : vector<1x1x8x8xf32> to vector<8x8xf32>
    %43 = vector.shape_cast %40 : vector<8x8xf32> to vector<1x1x8x8xf32>
    tpu.vector_store %arg6[%c0_29, %c3_30, %c0_31, %c0_32], %43 {strides = array<i32>} : memref<1x4x8x8xf32, #tpu.memory_space<vmem>>, vector<1x1x8x8xf32>,
    return
  }
  func.func @transform_0(%arg0: i32, %arg1: i32, %arg2: i32) -> (i32, i32, i32) {
    %c0_i32 = arith.constant 0 : i32
    %c0_i32_0 = arith.constant 0 : i32
    return %arg1, %arg2, %c0_i32 : i32, i32, i32
  }
  func.func @transform_1(%arg0: i32, %arg1: i32, %arg2: i32) -> (i32, i32) {
    %c0_i32 = arith.constant 0 : i32
    %c0_i32_0 = arith.constant 0 : i32
    return %arg0, %c0_i32 : i32, i32
  }
  func.func @transform_2(%arg0: i32, %arg1: i32, %arg2: i32) -> (i32, i32, i32) {
    %c0_i32 = arith.constant 0 : i32
    %c0_i32_0 = arith.constant 0 : i32
    %c0_i32_1 = arith.constant 0 : i32
    return %arg0, %c0_i32, %c0_i32_0 : i32, i32, i32
  }
  func.func @transform_3(%arg0: i32, %arg1: i32, %arg2: i32) -> (i32, i32, i32, i32) {
    %c0_i32 = arith.constant 0 : i32
    %c0_i32_0 = arith.constant 0 : i32
    return %arg1, %arg0, %arg2, %c0_i32 : i32, i32, i32, i32
  }
}

</mosaic_0001>

<bundles_post_ra>
// kernel: tpu_custom_call.1
= control target key start
LH: loop header
LB: loop body
LE: loop exit
PB: predicated region body
PF: predicated region fallthrough
CT: control target
= control target key end

     0   :  { %8 = vsyncpa [#allocation3], 0  ;;  %s1111_s0 = inlined_call_operand.hbm [shape: f32[2,8,32], index: 0, kind: input, shape index: {}]   ;;  %s1112_s1 = inlined_call_operand.hbm [shape: f32[32,32], index: 1, kind: input, shape index: {}]   ;;  %s1113_s2 = inlined_call_operand.vmem [shape: f32[4,1,8], index: 2, kind: input, shape index: {}]   ;;  %s1114_s3 = inlined_call_operand.hbm [shape: f32[2,4,8,8], index: 3, kind: output, shape index: {}]  }
   0x1   :  { %10 = vsyncpa [#allocation3 + $0x1], 0 }
   0x2   :  { %11 = vsyncpa [#allocation6], 0 }
   0x3   :  { %12 = vsyncpa [#allocation4], 0 }
   0x4   :  { %14 = vsyncpa [#allocation4 + $0x1], 0  ;;  %s865_s12 = smov 0   ;;  %s867_s13 = smov 0  }
   0x5   :  { %s869_s14 = smov 0   ;;  %s871_s15 = smov 0  }
   0x6   :  { %s873_s16 = smov 0   ;;  %s875_s17 = smov 0  }
   0x7 LB: > { %s542_s18 = sadd.s32 4294967295, %s828_s17   ;;  %s543_s19 = sadd.s32 4294967294, %s828_s17   ;;  %s828_s17 = sphi %s875_s17, %s20_s17   ;;  %s824_s16 = sphi %s873_s16, %s1140_s16   ;;  %s820_s15 = sphi %s871_s15, %s1139_s15   ;;  %s816_s14 = sphi %s869_s14, %s1138_s14   ;;  %s812_s13 = sphi %s867_s13, %s1137_s13   ;;  %s808_s12 = sphi %s865_s12, %s1136_s12  }
   0x8   : > { %p61_p0 = scmp.ne.s32.totalorder %s812_s13, %s808_s12  ;;  %p899_p1 = scmp.eq.s32.totalorder %s542_s18, 0 }
   0x9   : > { %p903_p2 = scmp.eq.s32.totalorder %s542_s18, 1  ;;  %p147_p3 = scmp.eq.s32.totalorder %s543_s19, 1 }
   0xa   : > { %s1119_s20 = scalar_select %p899_p1, 1, 0 }
   0xb   : > { %s1120_s21 = scalar_select %p903_p2, 1, 0 }
   0xc   : > { %p909_p4 = por %p899_p1, %p61_p0  ;;  %p544_p5 = scmp.ge.s32.totalorder %s828_s17, 1 }
   0xd   : > { %p914_p6 = por %p147_p3, %p61_p0  ;;  %p154_p7 = scmp.lt.s32.totalorder %s828_s17, 3 }
   0xe   : > { %s1121_s22 = scalar_select %p909_p4, 1, 0 }
   0xf   : > { %s1122_s23 = scalar_select %p914_p6, 1, 0 }
  0x10   : > { %p919_p8 = pnand %p544_p5, %p154_p7  ;;  %s830_s25 = smov [#allocation5]  }
  0x11   : > { %s169_s26 = sshll.u32 %s830_s25, 4  ;;  %s35_s28 = sadd.s32 1, %s824_s16  ;;  %s170_s26 = int_to_ptr.vmem [resolvable:$true] %s169_s26 }
  0x12   : > { %s1123_s24 = scalar_select %p919_p8, 1, 0 }
  0x13   : > { %p607_p9 = pneg %p919_p8  ;;  %s684_s4 = scalar_lea.hbm %s1112_s1, 512 }
  0x14   : > { %p685_p12 = scmp.ne.s32.totalorder %s1112_s1, %s684_s4  ;;  %p691_p5 = scmp.lt.u32.totalorder %s684_s4, %s1112_s1 }
  0x15   : > { %p928_p11 = pnand %p607_p9, %p899_p1 }
  0x17   : > { %p686_p13 = pneg %p928_p11 }
  0x19   : > { %p687_p0 = pnand %p686_p13, %p685_p12 }
  0x1b   : > { %p688_p3 = pneg %p687_p0 }
  0x1d   : > { %p693_p7 = pnand %p691_p5, %p688_p3 }
  0x1f   : > { %696 = shalt.err (!%p693_p7)
}
  0x20   : > { %s697_s9 = scalar_lea.vmem %s170_s26, 512  ;;  %p705_p1 = scmp.lt.s32.totalorder %s170_s26, %s170_s26 }
  0x21   : > { %p698_p9 = scmp.ne.s32.totalorder %s170_s26, %s697_s9  ;;  %p706_p4 = scmp.lt.s32.totalorder %s697_s9, %s697_s9 }
  0x23   : > { %p700_p10 = pnand %p698_p9, %p686_p13  ;;  %p707_p8 = por %p706_p4, %p705_p1 }
  0x25   : > { %p701_p6 = pneg %p700_p10 }
  0x27   : > { %p708_p2 = pnand %p707_p8, %p701_p6 }
  0x29   : > { %711 = shalt.err (!%p708_p2)
}
  0x2a   : > { %s831_s10 = smov 128   ;;  %s832_s11 = smov 8  }
  0x2b   : > { %610 = dma.hbm_to_vmem [thread:$0]  (!%p928_p11), %s1112_s1, 512, %s170_s26, [#allocation6], %s831_s10, %s831_s10, %s832_s11  }
  0x2c   : > { %p37_p1 = scmp.ge.s32.totalorder %s35_s28, 2  ;;  %s48_s25 = sadd.s32 1, %s816_s14 }
  0x2d   : > { %p55_p2 = scmp.ne.s32.totalorder %s816_s14, %s812_s13  ;;  %p56_p4 = scmp.eq.s32.totalorder %s828_s17, 0 }
  0x2e   : > { %s1142_s28 = smov (%p37_p1, %s35_s28), 0  ;;  %p1126_p8 = scmp.ne.s32.totalorder %s1120_s21, 0 }
  0x2f   : > { %p955_p6 = por %p56_p4, %p55_p2  ;;  %s43_s27 = ssub.s32 %s824_s16, %s1142_s28 }
  0x30   : > { %p961_p10 = por %p1126_p8, %p55_p2  ;;  %p620_p12 = scmp.lt.s32.totalorder %s828_s17, 2 }
  0x31   : > { %p46_p11 = scmp.eq.s32.totalorder %s43_s27, 0  ;;  %s191_s26 = sand.u32 1, %s816_s14  }
  0x32   : > { %s548_s4 = sshll.u32 %s191_s26, 3  ;;  %s549_s6 = sshll.u32 %s824_s16, 7 }
  0x33   : > { %s970_s5 = scalar_select %p46_p11, %s816_s14, %s48_s25  }
  0x34   : > { %s976_s9 = scalar_lea.hbm %s1111_s0, %s549_s6  ;;  %s195_s21 = scalar_lea.vmem [#allocation2], %s548_s4 }
  0x35   : > { %s203_s10 = sshll.u32 %s195_s21, 4  ;;  %p982_p13 = pnand %p620_p12, %p955_p6  ;;  %s978_s10 = int_to_ptr.vmem [resolvable:$true] %s203_s10 }
  0x36   : > { %s192_s18 = scalar_lea.sflag [#allocation3], %s191_s26  ;;  %s712_s19 = scalar_lea.hbm %s976_s9, 128 }
  0x37   : > { %p713_p0 = scmp.ne.s32.totalorder %s976_s9, %s712_s19  ;;  %p714_p3 = pneg %p982_p13 }
  0x38   : > { %s717_s4 = scalar_lea.hbm %s1111_s0, 256  ;;  %p718_p9 = scmp.lt.u32.totalorder %s976_s9, %s1111_s0 }
  0x39   : > { %p715_p5 = pnand %p714_p3, %p713_p0  ;;  %p719_p1 = scmp.lt.u32.totalorder %s717_s4, %s712_s19 }
  0x3a   : > { %p721_p4 = scmp.lt.u32.totalorder %s712_s19, %s976_s9 }
  0x3b   : > { %p716_p7 = pneg %p715_p5  ;;  %p720_p2 = por %p719_p1, %p718_p9 }
  0x3d   : > { %p722_p6 = por %p721_p4, %p720_p2 }
  0x3f   : > { %p723_p8 = pnand %p722_p6, %p716_p7 }
  0x41   : > { %726 = shalt.err (!%p723_p8)
}
  0x42   : > { %s727_s26 = scalar_lea.vmem %s978_s10, 128  ;;  %s833_s7 = smov [#allocation2]  }
  0x43   : > { %p728_p12 = scmp.ne.s32.totalorder %s978_s10, %s727_s26  ;;  %s732_s8 = sshll.u32 %s833_s7, 4  ;;  %s733_s8 = int_to_ptr.vmem [resolvable:$false] %s732_s8 }
  0x44   : > { %s734_s21 = scalar_lea.vmem %s733_s8, 256  ;;  %p735_p5 = scmp.lt.s32.totalorder %s978_s10, %s733_s8 }
  0x45   : > { %p730_p11 = pnand %p728_p12, %p714_p3  ;;  %p736_p9 = scmp.lt.s32.totalorder %s734_s21, %s727_s26 }
  0x47   : > { %p731_p0 = pneg %p730_p11  ;;  %p737_p1 = por %p736_p9, %p735_p5 }
  0x49   : > { %p738_p2 = pnand %p737_p1, %p731_p0 }
  0x4b   : > { %741 = shalt.err (!%p738_p2)
}
  0x4c   : > { %614 = dma.hbm_to_vmem [thread:$0]  (!%p982_p13), %s976_s9, 128, %s978_s10, %s192_s18  }
  0x4d   : > { %p1129_p7 = scmp.ne.s32.totalorder %s1123_s24, 0 }
  0x4e   : > { %s1014_s19 = sand.u32 (!%p1129_p7), 1, %s812_s13   ;;  %p1130_p3 = scmp.ne.s32.totalorder (!%p1129_p7), %s1121_s22, 0 }
  0x4f   : > { %212 = sbr.rel (%p1129_p7) target bundleno = 459 (0x1cb), region = 32  ;;  %s551_s25 = sshll.u32 (!%p1129_p7), %s1014_s19, 3 }
  0x50   : > { %s215_s27 = scalar_lea.sflag (!%p1129_p7), [#allocation3], %s1014_s19  ;;  %s218_s4 = scalar_lea.vmem (!%p1129_p7), [#allocation2], %s551_s25 }
  0x56   : > { %795 = dma.done.wait (%p1130_p3), %s215_s27, 128  }
  0x57   : > { %797 = vsyncadd (%p1130_p3), %s215_s27, 4294967168  ;;  %p1131_p4 = scmp.ne.s32.totalorder %s1119_s20, 0 }
  0x59   : > { %799 = dma.done.wait (%p1131_p4), [#allocation6], 512  }
  0x5a   : > { %801 = vsyncadd (%p1131_p4), [#allocation6], 4294966784  ;;  %v834_v0 = vmov 0.0|0.0   ;;  %vm835_vm0 = vmmov 0   ;;  %v836_v1 = vmov 0.0   ;;  %vm261_vm1 = vcmask 261120  }
  0x5b   : > { %591 = vmatprep.subr.bf16.mxu0 %v834_v0  ;;  %588 = vmatprep.mubr.msk.f32.mxu0 %vm835_vm0, %v836_v1  ;;  %v257_v2 = vld [vmem:[#allocation5] sm:$0xff]  ;;  %v258_v3 = vld [vmem:[#allocation5 + $0x8] sm:$0xff]  ;;  %vm1028_vm2 = vmpackc.low %vm261_vm1, %vm261_vm1  ;;  %s837_s20 = smov 8   ;;  %s838_s11 = smov 24   ;;  %vm356_vm3 = vcmask 64512  }
  0x5c   : > { %v592_v5 = vpack.c.bf16 %v258_v3, %v257_v2  ;;  %v561_v6 = vld [vmem:[%s1113_s2 + $0x1] ss:$0 sm:$0xff]  ;;  %v567_v7 = vld [vmem:[%s1113_s2 + $0x3] ss:$0 sm:$0xff]  ;;  %v564_v8 = vld [vmem:[%s1113_s2 + $0x2] ss:$0 sm:$0xff] }
  0x5d   : > { %365 = vrot.lane.b32.xlu0 %v561_v6, %s837_s20  ;;  %401 = vrot.lane.b32.xlu1 %v567_v7, %s838_s11  ;;  %v259_v9 = vld [vmem:[#allocation5 + $0x10] sm:$0xff]  ;;  %v260_v10 = vld [vmem:[#allocation5 + $0x18] sm:$0xff]  ;;  %s839_s6 = smov 16   ;;  %s553_s8 = sshll.u32 %s1014_s19, 5 }
  0x5e   : > { %594 = vmatpush3.bf16.xpose.msk.msra.mxu0 %vm1028_vm2, %v592_v5  ;;  %v596_v11 = vpack.c.bf16 %v260_v10, %v259_v9  ;;  %v256_v12 = vld [vmem:[%s218_s4] sm:$0xff]  ;;  %s840_s21 = smov 112   ;;  %s841_s25 = smov 120  }
  0x5f   : > { %595 = vmatprep.subr.bf16.mxu0 %v834_v0  ;;  %v559_v15 = vld [vmem:[%s1113_s2] ss:$0 sm:$0xff]  ;;  %s248_s27 = scalar_lea.vmem [#allocation7], %s553_s8  ;;  %s842_s4 = smov 104  }
  0x60   : > { %s429_s22 = sshll.u32 %s248_s27, 4  ;;  %s574_s24 = sshll.u32 %s820_s15, 9  ;;  %s1055_s22 = int_to_ptr.vmem [resolvable:$true] %s429_s22 }
  0x61   : > { %383 = vrot.lane.b32.xlu0 %v564_v8, %s839_s6  ;;  %s1060_s11 = scalar_lea.hbm %s1114_s3, %s574_s24  ;;  %s413_s18 = scalar_lea.sflag [#allocation4], %s1014_s19 }
  0x62   : > { %s742_s29 = scalar_lea.vmem %s1055_s22, 512  ;;  %s843_s15 = smov [#allocation7]  }
  0x63   : > { %p743_p13 = scmp.ne.s32.totalorder %s1055_s22, %s742_s29  ;;  %s746_s6 = sshll.u32 %s843_s15, 4  ;;  %s747_s6 = int_to_ptr.vmem [resolvable:$false] %s746_s6 }
  0x64   : > { %s748_s26 = scalar_lea.vmem %s747_s6, 1024  ;;  %p749_p12 = scmp.lt.s32.totalorder %s1055_s22, %s747_s6 }
  0x65   : > { %p744_p6 = pnand %p743_p13, %p961_p10  ;;  %p750_p11 = scmp.lt.s32.totalorder %s748_s26, %s742_s29 }
  0x66   : > { %598 = vmatpush3.bf16.xpose.msk.msra.mxu0 %vm1028_vm2, %v596_v11 }
  0x67   : > { %p745_p8 = pneg %p744_p6  ;;  %p751_p0 = por %p750_p11, %p749_p12 }
  0x69   : > { %p752_p5 = pnand %p751_p0, %p745_p8 }
  0x6d   : > { %589 = vmatmul.mubr.msk.f32.vlgmr.msra.gmra.mrb[0].mxu0 %vm261_vm1, %v256_v12 }
  0xcf   : > { %v366_v13 = vpop.permute.xlu0 %365  ;;  %v402_v16 = vpop.permute.xlu1 %401 }
  0xd3   : > { %v384_v14 = vpop.permute.xlu0 %383 }
 0x140   : > { %v343_v17 = vpop.f32.mrb[0].mxu0 }
 0x141   : > { %v354_v18 = vadd.f32 %v559_v15, %v343_v17  ;;  %v590_v19 = vpop.f32.mrb[1].mxu0  ;;  %v386_v20 = vadd.f32 %v384_v14, %v343_v17  ;;  %v368_v21 = vadd.f32 %v366_v13, %v343_v17  ;;  %v404_v25 = vadd.f32 %v402_v16, %v343_v17 }
 0x143   : > { %v355_v22 = vmul.f32 0.35355338, %v354_v18  ;;  %v387_v23 = vmul.f32 0.35355338, %v386_v20  ;;  %v369_v24 = vmul.f32 0.35355338, %v368_v21 }
 0x144   : > { %v405_v26 = vmul.f32 0.35355338, %v404_v25 }
 0x145   : > { %389 = vrot.lane.b32.xlu0 %v387_v23, %s840_s21  ;;  %371 = vrot.lane.b32.xlu1 %v369_v24, %s841_s25  ;;  %357 = vst.msk [vmem:[%s248_s27] sm:$0xff] %vm356_vm3, %v355_v22 }
 0x149   : > { %407 = vrot.lane.b32.xlu1 %v405_v26, %s842_s4 }
 0x1b7   : > { %v390_v27 = vpop.permute.xlu0 %389  ;;  %v372_v28 = vpop.permute.xlu1 %371 }
 0x1b8   : > { %565 = vst.msk [vmem:[%s248_s27 + $0x10] sm:$0xff] %vm356_vm3, %v390_v27  ;;  %562 = vst.msk [vmem:[%s248_s27 + $0x8] sm:$0xff] %vm356_vm3, %v372_v28 }
 0x1bb   : > { %v408_v29 = vpop.permute.xlu1 %407 }
 0x1bc   : > { %568 = vst.msk [vmem:[%s248_s27 + $0x18] sm:$0xff] %vm356_vm3, %v408_v29 }
 0x1bd   : > { %755 = shalt.err (!%p752_p5)
}
 0x1be   : > { %s756_s7 = scalar_lea.hbm %s1060_s11, 512  ;;  %s760_s25 = scalar_lea.hbm %s1114_s3, 1024 }
 0x1bf   : > { %p757_p9 = scmp.ne.s32.totalorder %s1060_s11, %s756_s7  ;;  %p761_p7 = scmp.lt.u32.totalorder %s1060_s11, %s1114_s3 }
 0x1c0   : > { %p762_p3 = scmp.lt.u32.totalorder %s760_s25, %s756_s7  ;;  %p764_p13 = scmp.lt.u32.totalorder %s756_s7, %s1060_s11 }
 0x1c1   : > { %p758_p1 = pnand %p757_p9, %p961_p10 }
 0x1c2   : > { %p763_p4 = por %p762_p3, %p761_p7 }
 0x1c3   : > { %p759_p2 = pneg %p758_p1 }
 0x1c4   : > { %p765_p6 = por %p764_p13, %p763_p4 }
 0x1c6   : > { %p766_p8 = pnand %p765_p6, %p759_p2 }
 0x1c8   : > { %769 = shalt.err (!%p766_p8)
}
 0x1c9   : > { %s844_s24 = smov 128  }
 0x1ca   : > { %605 = dma.vmem_to_hbm [thread:$0]  (%p961_p10), %s1055_s22, 512, %s1060_s11, %s413_s18, %s844_s24, %s844_s24, %s837_s20  }
 0x1cb PF: > { %s444_s9 = sand.u32 1, %s808_s12   ;;  %p1134_p12 = scmp.ne.s32.totalorder %s1122_s23, 0 }
 0x1cc   : > { %p1135_p11 = scmp.ge.s32.totalorder %s828_s17, 2  ;;  %s445_s10 = scalar_lea.sflag [#allocation4], %s444_s9 }
 0x1ce   : > { %p616_p0 = pnand %p1135_p11, %p1134_p12 }
 0x1d0   : > { %803 = dma.done.wait (!%p616_p0), %s445_s10, 512  }
 0x1d1   : > { %805 = vsyncadd (!%p616_p0), %s445_s10, 4294966784  ;;  %s20_s17 = sadd.s32 1, %s828_s17   ;;  %s1136_s12 = smov %s812_s13 }
 0x1d2   : > { %p17_p5 = scmp.ge.s32.totalorder %s20_s17, 4   ;;  %s1137_s13 = smov %s816_s14 }
 0x1d3   : > { %s1138_s14 = smov %s970_s5  ;;  %s1139_s15 = smov %s824_s16 }
 0x1d4   : > { %s1140_s16 = smov %s1142_s28  ;;  %19 = sbr.rel (!%p17_p5) target bundleno = 7 (0x7), region = 91 }
 0x1db   :  { %450 = vsyncpa [#allocation3], 1 }
 0x1dc   :  { %452 = vsyncpa [#allocation3 + $0x1], 1 }
 0x1dd   :  { %453 = vsyncpa [#allocation6], 1 }
 0x1de   :  { %454 = vsyncpa [#allocation4], 1 }
 0x1df   :  { %456 = vsyncpa [#allocation4 + $0x1], 1 }

</bundles_post_ra>
